<compile_context>
chip_gen: v6e
topology: v6e:2x2x1
jax: 0.10.0
libtpu: 0.0.40
codegen_flags: <defaults>
</compile_context>

<pallas_src>
import math

import jax
import jax.numpy as jnp
from jax.experimental import pallas as pl
from jax.experimental.pallas import tpu as pltpu


def _layernorm(x, gamma, beta, eps=1e-5):
    mu = jnp.mean(x, axis=-1, keepdims=True)
    var = jnp.mean((x - mu) ** 2, axis=-1, keepdims=True)
    return (x - mu) * jax.lax.rsqrt(var + eps) * gamma + beta


def _cross_attn_kernel(
    x_ref,        # (2B, H) f32 : rows [0,B) = x1, rows [B,2B) = x2
    w1_ref,       # (H, H)  bf16: folded Wv1 @ Wo1
    w2_ref,       # (H, H)  bf16: folded Wv2 @ Wo2
    wf1_ref,      # (H, 2H) bf16
    wf2_ref,      # (2H, H) bf16
    vec_ref,      # (9, H)  f32 : [b1, b2, g1, be1, g2, be2, g3, be3, bf2]
    bf1_ref,      # (1, 2H) f32
    out_ref,      # (2B, H) f32 : rows [0,B) = out1, rows [B,2B) = out2
):
    f32 = jnp.float32
    bf16 = jnp.bfloat16

    def dot(a, w_ref):
        # bf16 operands on the MXU, f32 accumulation.
        return jnp.dot(a.astype(bf16), w_ref[...], preferred_element_type=f32)

    x = x_ref[...]                       # (2B, H) f32
    B = x.shape[0] // 2
    x1 = x[:B]
    x2 = x[B:]

    # Packed per-channel vectors (static row slices of the VMEM slab are free).
    b1  = vec_ref[0:1, :]
    b2  = vec_ref[1:2, :]
    g1  = vec_ref[2:3, :]
    be1 = vec_ref[3:4, :]
    g2  = vec_ref[4:5, :]
    be2 = vec_ref[5:6, :]
    g3  = vec_ref[6:7, :]
    be3 = vec_ref[7:8, :]
    bf2 = vec_ref[8:9, :]

    # cross-attention 1 -> 2 (query = x1, key/value = x2).  Single key =>
    # softmax == 1, so attention is one folded matmul: x2 @ (Wv1@Wo1) + b1.
    a1 = dot(x2, w1_ref) + b1
    x1n = _layernorm(x1 + a1, g1, be1)

    # cross-attention 2 -> 1 (query = x2, key/value = updated x1).
    a2 = dot(x1n, w2_ref) + b2
    x2n = _layernorm(x2 + a2, g2, be2)

    # Shared FFN + shared norm3: stack both streams (stays in vregs, no VMEM
    # round-trip through out_ref) and run the FFN weights through the MXU once.
    xs = jnp.concatenate([x1n, x2n], axis=0)               # (2B, H) f32
    h = jnp.maximum(dot(xs, wf1_ref) + bf1_ref[...], 0.0)  # (2B, 2H)
    y = dot(h, wf2_ref) + bf2                               # (2B, H)
    out_ref[...] = _layernorm(xs + y, g3, be3)               # single lane-dense store


def prepare_params(params):
    """One-time parameter preparation (fold Wv@Wo in f32, cast weights to bf16,
    pack the H-wide bias/gamma/beta vectors into one slab).  Call once; reuse
    the result across invocations so no cast/fold ops run per call."""
    (wq1, wk1, wv1, bq1, bk1, bv1, wo1, bo1,
     wq2, wk2, wv2, bq2, bk2, bv2, wo2, bo2,
     g1, be1, g2, be2, g3, be3,
     wf1, bf1, wf2, bf2) = params
    # Q/K projections are dead math for seq_len == 1 (softmax over one key == 1.0).
    del wq1, wk1, bq1, bk1, wq2, wk2, bq2, bk2

    f32, bf16 = jnp.float32, jnp.bfloat16
    # Fold V-projection and output-projection in f32, then cast (avoids
    # compounding bf16 rounding in the fold itself).
    w1 = (wv1.astype(f32) @ wo1.astype(f32)).astype(bf16)          # (H, H)
    b1 = (bv1.astype(f32) @ wo1.astype(f32) + bo1.astype(f32))     # (1, H)
    w2 = (wv2.astype(f32) @ wo2.astype(f32)).astype(bf16)          # (H, H)
    b2 = (bv2.astype(f32) @ wo2.astype(f32) + bo2.astype(f32))     # (1, H)

    vecs = jnp.concatenate(
        [b1, b2, g1, be1, g2, be2, g3, be3, bf2], axis=0).astype(f32)   # (9, H)

    return (w1, w2, wf1.astype(bf16), wf2.astype(bf16), vecs, bf1.astype(f32))


def cross_attention_layer(x1, x2, prepped):
    """x1, x2: (B, 1, H) float32; prepped = prepare_params(params).
    Returns (out1, out2, attn_w_1_to_2, attn_w_2_to_1)."""
    B, S, H = x1.shape
    assert S == 1, "module is defined for seq_len == 1"

    f32 = jnp.float32
    # One stacked (2B, H) input: halves the input DMA count and matches the
    # output slab layout.
    x = jnp.concatenate([x1.reshape(B, H), x2.reshape(B, H)], axis=0).astype(f32)

    w1, w2, wf1, wf2, vecs, bf1 = prepped
    kernel_inputs = (x, w1, w2, wf1, wf2, vecs, bf1)

    vmem = pl.BlockSpec(memory_space=pltpu.MemorySpace.VMEM)
    out = pl.pallas_call(
        _cross_attn_kernel,
        out_shape=jax.ShapeDtypeStruct((2 * B, H), f32),
        in_specs=[vmem] * len(kernel_inputs),
        out_specs=vmem,
    )(*kernel_inputs)

    out1 = out[:B].reshape(B, 1, H)
    out2 = out[B:].reshape(B, 1, H)
    # softmax over a single key position is identically 1.0 (head-averaged too).
    attn_w = jnp.ones((B, 1, 1), f32)
    return out1, out2, attn_w, attn_w


def init_params(key, H):
    """Deterministic synthetic parameters (shapes follow the nn.Module __init__).
    Linear weights are stored pre-transposed as (in_features, out_features)."""
    ks = jax.random.split(key, 20)
    s = 1.0 / math.sqrt(H)

    def w(k, shape):
        return jax.random.uniform(k, shape, jnp.float32, -s, s)

    return (
        # cross_attn_1_to_2: in_proj (q,k,v) + out_proj
        w(ks[0], (H, H)), w(ks[1], (H, H)), w(ks[2], (H, H)),
        w(ks[3], (1, H)), w(ks[4], (1, H)), w(ks[5], (1, H)),
        w(ks[6], (H, H)), w(ks[7], (1, H)),
        # cross_attn_2_to_1
        w(ks[8], (H, H)), w(ks[9], (H, H)), w(ks[10], (H, H)),
        w(ks[11], (1, H)), w(ks[12], (1, H)), w(ks[13], (1, H)),
        w(ks[14], (H, H)), w(ks[15], (1, H)),
        # norm1, norm2, norm3 (gamma, beta)
        jnp.ones((1, H), jnp.float32), jnp.zeros((1, H), jnp.float32),
        jnp.ones((1, H), jnp.float32), jnp.zeros((1, H), jnp.float32),
        jnp.ones((1, H), jnp.float32), jnp.zeros((1, H), jnp.float32),
        # ffn: Linear(H, 2H), Linear(2H, H)
        w(ks[16], (H, 2 * H)), w(ks[17], (1, 2 * H)),
        w(ks[18], (2 * H, H)), w(ks[19], (1, H)),
    )


def reference(x1, x2, params, num_heads):
    """Pure-JAX f32 reference mirroring the PyTorch forward (eval mode)."""
    (wq1, wk1, wv1, bq1, bk1, bv1, wo1, bo1,
     wq2, wk2, wv2, bq2, bk2, bv2, wo2, bo2,
     g1, be1, g2, be2, g3, be3,
     wf1, bf1, wf2, bf2) = params
    B, _, H = x1.shape
    hd = H // num_heads

    def ln(x, g, b):
        mu = x.mean(-1, keepdims=True)
        var = ((x - mu) ** 2).mean(-1, keepdims=True)
        return (x - mu) / jnp.sqrt(var + 1e-5) * g + b

    def mha(qx, kvx, wq, wk, wv, bq, bk, bv, wo, bo):
        Lq, Lk = qx.shape[1], kvx.shape[1]
        q = (qx @ wq + bq).reshape(B, Lq, num_heads, hd).transpose(0, 2, 1, 3)
        k = (kvx @ wk + bk).reshape(B, Lk, num_heads, hd).transpose(0, 2, 1, 3)
        v = (kvx @ wv + bv).reshape(B, Lk, num_heads, hd).transpose(0, 2, 1, 3)
        sc = jnp.einsum("bhqd,bhkd->bhqk", q, k) / math.sqrt(hd)
        wts = jax.nn.softmax(sc, axis=-1)
        a = jnp.einsum("bhqk,bhkd->bhqd", wts, v).transpose(0, 2, 1, 3).reshape(B, Lq, H)
        return a @ wo + bo, wts.mean(axis=1)

    a1, w12 = mha(x1, x2, wq1, wk1, wv1, bq1, bk1, bv1, wo1, bo1)
    x1 = ln(x1 + a1, g1, be1)
    a2, w21 = mha(x2, x1, wq2, wk2, wv2, bq2, bk2, bv2, wo2, bo2)
    x2 = ln(x2 + a2, g2, be2)

    def ffn(x):
        return jnp.maximum(x @ wf1 + bf1, 0.0) @ wf2 + bf2

    x1 = ln(x1 + ffn(x1), g3, be3)
    x2 = ln(x2 + ffn(x2), g3, be3)
    return x1, x2, w12, w21


if __name__ == "__main__":
    B, S, H, NUM_HEADS = 8, 1, 128, 4   # small, TPU-tile-friendly (B on sublanes, H on lanes)
    key = jax.random.PRNGKey(0)
    kx1, kx2, kp = jax.random.split(key, 3)
    x1 = jax.random.normal(kx1, (B, S, H), jnp.float32)
    x2 = jax.random.normal(kx2, (B, S, H), jnp.float32)
    params = init_params(kp, H)

    # One-time fold / cast / pack (hoisted out of the per-call path).
    prepped = jax.block_until_ready(prepare_params(params))

    o1, o2, w12, w21 = cross_attention_layer(x1, x2, prepped)
    jax.block_until_ready((o1, o2, w12, w21))

    r1, r2, rw12, rw21 = reference(x1, x2, params, NUM_HEADS)
    assert o1.shape == (B, S, H) and o2.shape == (B, S, H)
    assert w12.shape == (B, S, S) and w21.shape == (B, S, S)
    # bf16 MXU operands with f32 accumulation -> slightly looser tolerance than pure f32.
    assert jnp.allclose(o1, r1, rtol=5e-2, atol=5e-2)
    assert jnp.allclose(o2, r2, rtol=5e-2, atol=5e-2)
    assert jnp.allclose(w12, rw12, rtol=1e-6, atol=1e-6)
    assert jnp.allclose(w21, rw21, rtol=1e-6, atol=1e-6)
    print("KERNEL_OK")
</pallas_src>

<mosaic_0001>
module attributes {stable_mosaic.version = 11 : i64} {
  func.func @_cross_attn_kernel(%arg0: memref<16x128xf32, #tpu.memory_space<vmem>>, %arg1: memref<128x128xbf16, #tpu.memory_space<vmem>>, %arg2: memref<128x128xbf16, #tpu.memory_space<vmem>>, %arg3: memref<128x256xbf16, #tpu.memory_space<vmem>>, %arg4: memref<256x128xbf16, #tpu.memory_space<vmem>>, %arg5: memref<9x128xf32, #tpu.memory_space<vmem>>, %arg6: memref<1x256xf32, #tpu.memory_space<vmem>>, %arg7: memref<16x128xf32, #tpu.memory_space<vmem>>) attributes {dimension_semantics = [], scalar_prefetch = 0 : i64, scratch_operands = 0 : i64, tpu.core_type = #tpu.core_type<tc>} {
    %c0 = arith.constant 0 : index
    %c0_0 = arith.constant 0 : index
    %0 = vector.load %arg0[%c0, %c0_0] : memref<16x128xf32, #tpu.memory_space<vmem>>, vector<16x128xf32>
    %1 = vector.extract_strided_slice %0 {offsets = [0, 0], sizes = [8, 128], strides = [1, 1]} : vector<16x128xf32> to vector<8x128xf32>
    %2 = vector.extract_strided_slice %0 {offsets = [8, 0], sizes = [8, 128], strides = [1, 1]} : vector<16x128xf32> to vector<8x128xf32>
    %c0_1 = arith.constant 0 : index
    %c0_2 = arith.constant 0 : index
    %3 = vector.load %arg5[%c0_1, %c0_2] : memref<9x128xf32, #tpu.memory_space<vmem>>, vector<1x128xf32>
    %c1 = arith.constant 1 : index
    %c0_3 = arith.constant 0 : index
    %4 = vector.load %arg5[%c1, %c0_3] : memref<9x128xf32, #tpu.memory_space<vmem>>, vector<1x128xf32>
    %c2 = arith.constant 2 : index
    %c0_4 = arith.constant 0 : index
    %5 = vector.load %arg5[%c2, %c0_4] : memref<9x128xf32, #tpu.memory_space<vmem>>, vector<1x128xf32>
    %c3 = arith.constant 3 : index
    %c0_5 = arith.constant 0 : index
    %6 = vector.load %arg5[%c3, %c0_5] : memref<9x128xf32, #tpu.memory_space<vmem>>, vector<1x128xf32>
    %c4 = arith.constant 4 : index
    %c0_6 = arith.constant 0 : index
    %7 = vector.load %arg5[%c4, %c0_6] : memref<9x128xf32, #tpu.memory_space<vmem>>, vector<1x128xf32>
    %c5 = arith.constant 5 : index
    %c0_7 = arith.constant 0 : index
    %8 = vector.load %arg5[%c5, %c0_7] : memref<9x128xf32, #tpu.memory_space<vmem>>, vector<1x128xf32>
    %c6 = arith.constant 6 : index
    %c0_8 = arith.constant 0 : index
    %9 = vector.load %arg5[%c6, %c0_8] : memref<9x128xf32, #tpu.memory_space<vmem>>, vector<1x128xf32>
    %c7 = arith.constant 7 : index
    %c0_9 = arith.constant 0 : index
    %10 = vector.load %arg5[%c7, %c0_9] : memref<9x128xf32, #tpu.memory_space<vmem>>, vector<1x128xf32>
    %c8 = arith.constant 8 : index
    %c0_10 = arith.constant 0 : index
    %11 = vector.load %arg5[%c8, %c0_10] : memref<9x128xf32, #tpu.memory_space<vmem>>, vector<1x128xf32>
    %12 = arith.truncf %2 : vector<8x128xf32> to vector<8x128xbf16>
    %c0_11 = arith.constant 0 : index
    %c0_12 = arith.constant 0 : index
    %13 = vector.load %arg1[%c0_11, %c0_12] : memref<128x128xbf16, #tpu.memory_space<vmem>>, vector<128x128xbf16>
    %cst = arith.constant dense<0.000000e+00> : vector<8x128xf32>
    %14 = tpu.matmul %12, %13, %cst {dimension_numbers = #tpu.dot_dimension_numbers<[1], [0], [0], [1], [0, 0, 1, 1], [], []>} : vector<8x128xbf16>, vector<128x128xbf16>, vector<8x128xf32> -> vector<8x128xf32>
    %15 = vector.broadcast %3 : vector<1x128xf32> to vector<8x128xf32>
    %16 = arith.addf %14, %15 : vector<8x128xf32>
    %17 = arith.addf %1, %16 : vector<8x128xf32>
    %cst_13 = arith.constant dense<0.000000e+00> : vector<8xf32>
    %18 = vector.multi_reduction <add>, %17, %cst_13 [1] : vector<8x128xf32> to vector<8xf32>
    %19 = vector.shape_cast %18 : vector<8xf32> to vector<8x1xf32>
    %cst_14 = arith.constant 1.280000e+02 : f32
    %20 = vector.broadcast %cst_14 : f32 to vector<8x1xf32>
    %21 = arith.divf %19, %20 : vector<8x1xf32>
    %22 = vector.broadcast %21 : vector<8x1xf32> to vector<8x128xf32>
    %23 = arith.subf %17, %22 : vector<8x128xf32>
    %24 = arith.mulf %23, %23 : vector<8x128xf32>
    %cst_15 = arith.constant dense<0.000000e+00> : vector<8xf32>
    %25 = vector.multi_reduction <add>, %24, %cst_15 [1] : vector<8x128xf32> to vector<8xf32>
    %26 = vector.shape_cast %25 : vector<8xf32> to vector<8x1xf32>
    %cst_16 = arith.constant 1.280000e+02 : f32
    %27 = vector.broadcast %cst_16 : f32 to vector<8x1xf32>
    %28 = arith.divf %26, %27 : vector<8x1xf32>
    %29 = vector.broadcast %21 : vector<8x1xf32> to vector<8x128xf32>
    %30 = arith.subf %17, %29 : vector<8x128xf32>
    %cst_17 = arith.constant 9.99999974E-6 : f32
    %31 = vector.broadcast %cst_17 : f32 to vector<8x1xf32>
    %32 = arith.addf %28, %31 : vector<8x1xf32>
    %33 = math.rsqrt %32 : vector<8x1xf32>
    %34 = vector.broadcast %33 : vector<8x1xf32> to vector<8x128xf32>
    %35 = arith.mulf %30, %34 : vector<8x128xf32>
    %36 = vector.broadcast %5 : vector<1x128xf32> to vector<8x128xf32>
    %37 = arith.mulf %35, %36 : vector<8x128xf32>
    %38 = vector.broadcast %6 : vector<1x128xf32> to vector<8x128xf32>
    %39 = arith.addf %37, %38 : vector<8x128xf32>
    %40 = arith.truncf %39 : vector<8x128xf32> to vector<8x128xbf16>
    %c0_18 = arith.constant 0 : index
    %c0_19 = arith.constant 0 : index
    %41 = vector.load %arg2[%c0_18, %c0_19] : memref<128x128xbf16, #tpu.memory_space<vmem>>, vector<128x128xbf16>
    %cst_20 = arith.constant dense<0.000000e+00> : vector<8x128xf32>
    %42 = tpu.matmul %40, %41, %cst_20 {dimension_numbers = #tpu.dot_dimension_numbers<[1], [0], [0], [1], [0, 0, 1, 1], [], []>} : vector<8x128xbf16>, vector<128x128xbf16>, vector<8x128xf32> -> vector<8x128xf32>
    %43 = vector.broadcast %4 : vector<1x128xf32> to vector<8x128xf32>
    %44 = arith.addf %42, %43 : vector<8x128xf32>
    %45 = arith.addf %2, %44 : vector<8x128xf32>
    %cst_21 = arith.constant dense<0.000000e+00> : vector<8xf32>
    %46 = vector.multi_reduction <add>, %45, %cst_21 [1] : vector<8x128xf32> to vector<8xf32>
    %47 = vector.shape_cast %46 : vector<8xf32> to vector<8x1xf32>
    %cst_22 = arith.constant 1.280000e+02 : f32
    %48 = vector.broadcast %cst_22 : f32 to vector<8x1xf32>
    %49 = arith.divf %47, %48 : vector<8x1xf32>
    %50 = vector.broadcast %49 : vector<8x1xf32> to vector<8x128xf32>
    %51 = arith.subf %45, %50 : vector<8x128xf32>
    %52 = arith.mulf %51, %51 : vector<8x128xf32>
    %cst_23 = arith.constant dense<0.000000e+00> : vector<8xf32>
    %53 = vector.multi_reduction <add>, %52, %cst_23 [1] : vector<8x128xf32> to vector<8xf32>
    %54 = vector.shape_cast %53 : vector<8xf32> to vector<8x1xf32>
    %cst_24 = arith.constant 1.280000e+02 : f32
    %55 = vector.broadcast %cst_24 : f32 to vector<8x1xf32>
    %56 = arith.divf %54, %55 : vector<8x1xf32>
    %57 = vector.broadcast %49 : vector<8x1xf32> to vector<8x128xf32>
    %58 = arith.subf %45, %57 : vector<8x128xf32>
    %cst_25 = arith.constant 9.99999974E-6 : f32
    %59 = vector.broadcast %cst_25 : f32 to vector<8x1xf32>
    %60 = arith.addf %56, %59 : vector<8x1xf32>
    %61 = math.rsqrt %60 : vector<8x1xf32>
    %62 = vector.broadcast %61 : vector<8x1xf32> to vector<8x128xf32>
    %63 = arith.mulf %58, %62 : vector<8x128xf32>
    %64 = vector.broadcast %7 : vector<1x128xf32> to vector<8x128xf32>
    %65 = arith.mulf %63, %64 : vector<8x128xf32>
    %66 = vector.broadcast %8 : vector<1x128xf32> to vector<8x128xf32>
    %67 = arith.addf %65, %66 : vector<8x128xf32>
    %68 = tpu.concatenate %39, %67 in 0 : vector<8x128xf32>, vector<8x128xf32> -> vector<16x128xf32>
    %69 = arith.truncf %68 : vector<16x128xf32> to vector<16x128xbf16>
    %c0_26 = arith.constant 0 : index
    %c0_27 = arith.constant 0 : index
    %70 = vector.load %arg3[%c0_26, %c0_27] : memref<128x256xbf16, #tpu.memory_space<vmem>>, vector<128x256xbf16>
    %cst_28 = arith.constant dense<0.000000e+00> : vector<16x256xf32>
    %71 = tpu.matmul %69, %70, %cst_28 {dimension_numbers = #tpu.dot_dimension_numbers<[1], [0], [0], [1], [0, 0, 1, 1], [], []>} : vector<16x128xbf16>, vector<128x256xbf16>, vector<16x256xf32> -> vector<16x256xf32>
    %c0_29 = arith.constant 0 : index
    %c0_30 = arith.constant 0 : index
    %72 = vector.load %arg6[%c0_29, %c0_30] : memref<1x256xf32, #tpu.memory_space<vmem>>, vector<1x256xf32>
    %73 = vector.broadcast %72 : vector<1x256xf32> to vector<16x256xf32>
    %74 = arith.addf %71, %73 : vector<16x256xf32>
    %cst_31 = arith.constant 0.000000e+00 : f32
    %75 = vector.broadcast %cst_31 : f32 to vector<16x256xf32>
    %76 = arith.maximumf %74, %75 : vector<16x256xf32>
    %77 = arith.truncf %76 : vector<16x256xf32> to vector<16x256xbf16>
    %c0_32 = arith.constant 0 : index
    %c0_33 = arith.constant 0 : index
    %78 = vector.load %arg4[%c0_32, %c0_33] : memref<256x128xbf16, #tpu.memory_space<vmem>>, vector<256x128xbf16>
    %cst_34 = arith.constant dense<0.000000e+00> : vector<16x128xf32>
    %79 = tpu.matmul %77, %78, %cst_34 {dimension_numbers = #tpu.dot_dimension_numbers<[1], [0], [0], [1], [0, 0, 1, 1], [], []>} : vector<16x256xbf16>, vector<256x128xbf16>, vector<16x128xf32> -> vector<16x128xf32>
    %80 = vector.broadcast %11 : vector<1x128xf32> to vector<16x128xf32>
    %81 = arith.addf %79, %80 : vector<16x128xf32>
    %82 = arith.addf %68, %81 : vector<16x128xf32>
    %cst_35 = arith.constant dense<0.000000e+00> : vector<16xf32>
    %83 = vector.multi_reduction <add>, %82, %cst_35 [1] : vector<16x128xf32> to vector<16xf32>
    %84 = vector.shape_cast %83 : vector<16xf32> to vector<16x1xf32>
    %cst_36 = arith.constant 1.280000e+02 : f32
    %85 = vector.broadcast %cst_36 : f32 to vector<16x1xf32>
    %86 = arith.divf %84, %85 : vector<16x1xf32>
    %87 = vector.broadcast %86 : vector<16x1xf32> to vector<16x128xf32>
    %88 = arith.subf %82, %87 : vector<16x128xf32>
    %89 = arith.mulf %88, %88 : vector<16x128xf32>
    %cst_37 = arith.constant dense<0.000000e+00> : vector<16xf32>
    %90 = vector.multi_reduction <add>, %89, %cst_37 [1] : vector<16x128xf32> to vector<16xf32>
    %91 = vector.shape_cast %90 : vector<16xf32> to vector<16x1xf32>
    %cst_38 = arith.constant 1.280000e+02 : f32
    %92 = vector.broadcast %cst_38 : f32 to vector<16x1xf32>
    %93 = arith.divf %91, %92 : vector<16x1xf32>
    %94 = vector.broadcast %86 : vector<16x1xf32> to vector<16x128xf32>
    %95 = arith.subf %82, %94 : vector<16x128xf32>
    %cst_39 = arith.constant 9.99999974E-6 : f32
    %96 = vector.broadcast %cst_39 : f32 to vector<16x1xf32>
    %97 = arith.addf %93, %96 : vector<16x1xf32>
    %98 = math.rsqrt %97 : vector<16x1xf32>
    %99 = vector.broadcast %98 : vector<16x1xf32> to vector<16x128xf32>
    %100 = arith.mulf %95, %99 : vector<16x128xf32>
    %101 = vector.broadcast %9 : vector<1x128xf32> to vector<16x128xf32>
    %102 = arith.mulf %100, %101 : vector<16x128xf32>
    %103 = vector.broadcast %10 : vector<1x128xf32> to vector<16x128xf32>
    %104 = arith.addf %102, %103 : vector<16x128xf32>
    %c0_40 = arith.constant 0 : index
    %c0_41 = arith.constant 0 : index
    %105 = vector.load %arg7[%c0_40, %c0_41] : memref<16x128xf32, #tpu.memory_space<vmem>>, vector<16x128xf32>
    tpu.vector_store %arg7[%c0_40, %c0_41], %104 {strides = array<i32>} : memref<16x128xf32, #tpu.memory_space<vmem>>, vector<16x128xf32>,
    return
  }
}

</mosaic_0001>

<bundles_post_ra>
// kernel: tpu_custom_call.1
= control target key start
LH: loop header
LB: loop body
LE: loop exit
PB: predicated region body
PF: predicated region fallthrough
CT: control target
= control target key end

     0   :  { %12 = vsyncpa [#allocation3], 0  ;;  %s1261_s0 = inlined_call_operand.hbm [shape: f32[16,128], index: 0, kind: input, shape index: {}]   ;;  %s1262_s1 = inlined_call_operand.hbm [shape: bf16[128,128], index: 1, kind: input, shape index: {}]   ;;  %s1263_s2 = inlined_call_operand.hbm [shape: bf16[128,128], index: 2, kind: input, shape index: {}]   ;;  %s1264_s3 = inlined_call_operand.hbm [shape: bf16[128,256], index: 3, kind: input, shape index: {}]   ;;  %s1265_s4 = inlined_call_operand.hbm [shape: bf16[256,128], index: 4, kind: input, shape index: {}]   ;;  %s1266_s5 = inlined_call_operand.hbm [shape: f32[9,128], index: 5, kind: input, shape index: {}]   ;;  %s1267_s6 = inlined_call_operand.vmem [shape: f32[1,256], index: 6, kind: input, shape index: {}]   ;;  %s1268_s7 = inlined_call_operand.hbm [shape: f32[16,128], index: 7, kind: output, shape index: {}]  }
   0x1   :  { %13 = vsyncpa [#allocation6], 0 }
   0x2   :  { %14 = vsyncpa [#allocation9], 0 }
   0x3   :  { %15 = vsyncpa [#allocation12], 0 }
   0x4   :  { %16 = vsyncpa [#allocation4], 0  ;;  %s1138_s24 = smov [#allocation5]  }
   0x5   :  { %s34_s25 = sshll.u32 %s1138_s24, 4  ;;  %s35_s25 = int_to_ptr.vmem [resolvable:$true] %s34_s25 }
   0x6   :  { %s996_s26 = scalar_lea.vmem %s35_s25, 1024  ;;  %p1001_p1 = scmp.lt.s32.totalorder %s35_s25, %s35_s25 }
   0x7   :  { %p997_p0 = scmp.ne.s32.totalorder %s35_s25, %s996_s26  ;;  %p1002_p2 = scmp.lt.s32.totalorder %s996_s26, %s996_s26 }
   0x9   :  { %p1003_p3 = por %p1002_p2, %p1001_p1 }
   0xb   :  { %p1004_p4 = pnand %p1003_p3, %p997_p0 }
   0xd   :  { %1007 = shalt.err (!%p1004_p4)
}
   0xe   :  { %s1139_s27 = smov 64   ;;  %s1140_s28 = smov 4  }
   0xf   :  { %40 = dma.hbm_to_vmem [thread:$0]  %s1262_s1, 1024, %s35_s25, [#allocation6], %s1139_s27, %s1139_s27, %s1140_s28  }
  0x10   :  { %s1141_s8 = smov [#allocation8]   ;;  %s1142_s10 = smov [#allocation2]  }
  0x11   :  { %s58_s9 = sshll.u32 %s1141_s8, 4  ;;  %s22_s11 = sshll.u32 %s1142_s10, 4  ;;  %s59_s9 = int_to_ptr.vmem [resolvable:$true] %s58_s9  ;;  %s23_s11 = int_to_ptr.vmem [resolvable:$true] %s22_s11 }
  0x12   :  { %s1016_s12 = scalar_lea.vmem %s59_s9, 2048  ;;  %p1021_p6 = scmp.lt.s32.totalorder %s59_s9, %s59_s9 }
  0x13   :  { %p1017_p5 = scmp.ne.s32.totalorder %s59_s9, %s1016_s12  ;;  %p1022_p7 = scmp.lt.s32.totalorder %s1016_s12, %s1016_s12 }
  0x15   :  { %p1023_p8 = por %p1022_p7, %p1021_p6 }
  0x17   :  { %p1024_p9 = pnand %p1023_p8, %p1017_p5 }
  0x19   :  { %1027 = shalt.err (!%p1024_p9)
}
  0x1a   :  { %s1143_s13 = smov 128   ;;  %s1144_s14 = smov 8  }
  0x1b   :  { %64 = dma.hbm_to_vmem [thread:$0]  %s1264_s3, 2048, %s59_s9, [#allocation9], %s1143_s13, %s1143_s13, %s1144_s14  }
  0x1c   :  { %s1036_s1 = scalar_lea.vmem %s23_s11, 256  ;;  %p1041_p11 = scmp.lt.s32.totalorder %s23_s11, %s23_s11 }
  0x1d   :  { %p1037_p10 = scmp.ne.s32.totalorder %s23_s11, %s1036_s1  ;;  %p1042_p12 = scmp.lt.s32.totalorder %s1036_s1, %s1036_s1 }
  0x1f   :  { %p1043_p13 = por %p1042_p12, %p1041_p11 }
  0x21   :  { %p1044_p0 = pnand %p1043_p13, %p1037_p10 }
  0x23   :  { %1047 = shalt.err (!%p1044_p0)
}
  0x24   :  { %28 = dma.hbm_to_vmem [thread:$0]  %s1261_s0, 256, %s23_s11, [#allocation3], %s1143_s13, %s1143_s13, %s1144_s14  }
  0x25   :  { %s1145_s19 = smov [#allocation7]   ;;  %s1146_s21 = smov [#allocation10]  }
  0x26   :  { %s46_s20 = sshll.u32 %s1145_s19, 4  ;;  %s70_s3 = sshll.u32 %s1146_s21, 4  ;;  %s47_s20 = int_to_ptr.vmem [resolvable:$true] %s46_s20  ;;  %s71_s3 = int_to_ptr.vmem [resolvable:$true] %s70_s3 }
  0x27   :  { %s1056_s22 = scalar_lea.vmem %s47_s20, 1024  ;;  %p1061_p2 = scmp.lt.s32.totalorder %s47_s20, %s47_s20 }
  0x28   :  { %p1057_p1 = scmp.ne.s32.totalorder %s47_s20, %s1056_s22  ;;  %p1062_p3 = scmp.lt.s32.totalorder %s1056_s22, %s1056_s22 }
  0x2a   :  { %p1063_p4 = por %p1062_p3, %p1061_p2 }
  0x2c   :  { %p1064_p5 = pnand %p1063_p4, %p1057_p1 }
  0x2e   :  { %1067 = shalt.err (!%p1064_p5)
}
  0x2f   :  { %52 = dma.hbm_to_vmem [thread:$0]  %s1263_s2, 1024, %s47_s20, [#allocation6], %s1139_s27, %s1139_s27, %s1140_s28  }
  0x30   :  { %s1076_s0 = scalar_lea.vmem %s71_s3, 2048  ;;  %p1081_p7 = scmp.lt.s32.totalorder %s71_s3, %s71_s3 }
  0x31   :  { %p1077_p6 = scmp.ne.s32.totalorder %s71_s3, %s1076_s0  ;;  %p1082_p8 = scmp.lt.s32.totalorder %s1076_s0, %s1076_s0 }
  0x33   :  { %p1083_p9 = por %p1082_p8, %p1081_p7 }
  0x35   :  { %p1084_p10 = pnand %p1083_p9, %p1077_p6 }
  0x37   :  { %1087 = shalt.err (!%p1084_p10)
}
  0x38   :  { %76 = dma.hbm_to_vmem [thread:$0]  %s1265_s4, 2048, %s71_s3, [#allocation9], %s1139_s27, %s1139_s27, %s1140_s28  }
  0x39   :  { %s1147_s29 = smov [#allocation11]  }
  0x3a   :  { %s82_s30 = sshll.u32 %s1147_s29, 4  ;;  %s83_s30 = int_to_ptr.vmem [resolvable:$true] %s82_s30 }
  0x3b   :  { %s1096_s8 = scalar_lea.vmem %s83_s30, 256  ;;  %p1101_p12 = scmp.lt.s32.totalorder %s83_s30, %s83_s30 }
  0x3c   :  { %p1097_p11 = scmp.ne.s32.totalorder %s83_s30, %s1096_s8  ;;  %p1102_p13 = scmp.lt.s32.totalorder %s1096_s8, %s1096_s8 }
  0x3e   :  { %p1103_p0 = por %p1102_p13, %p1101_p12 }
  0x40   :  { %p1104_p1 = pnand %p1103_p0, %p1097_p11 }
  0x42   :  { %1107 = shalt.err (!%p1104_p1)
}
  0x43   :  { %88 = dma.hbm_to_vmem [thread:$0]  %s1266_s5, 256, %s83_s30, [#allocation12], %s1143_s13, %s1143_s13, %s1144_s14  }
  0x44   :  { %1128 = dma.done.wait [#allocation3], 256  }
  0x45   :  { %1129 = vsyncadd [#allocation3], 4294967040 }
  0x46   :  { %1130 = dma.done.wait [#allocation6], 2048  }
  0x47   :  { %1131 = vsyncadd [#allocation6], 4294965248 }
  0x48   :  { %1132 = dma.done.wait [#allocation9], 4096  }
  0x49   :  { %1133 = vsyncadd [#allocation9], 4294963200 }
  0x4a   :  { %1134 = dma.done.wait [#allocation12], 256  }
  0x4b   :  { %1135 = vsyncadd [#allocation12], 4294967040  ;;  %v1148_v0 = vmov 0.0   ;;  %vm1149_vm0 = vmmov 0   ;;  %v924_v1 = vld [vmem:[#allocation5 + $0x38] sm:$0xff]   ;;  %v925_v2 = vld [vmem:[#allocation5 + $0x30] sm:$0xff]  }
  0x4c   :  { %870 = vmatprep.subr.bf16.mxu0 %v1148_v0  ;;  %886 = vmatprep.mubr.msk.bf16.mxu0 %vm1149_vm0, %v1148_v0  ;;  %v926_v3 = vld [vmem:[#allocation5 + $0x28] sm:$0xff]   ;;  %v927_v4 = vld [vmem:[#allocation5 + $0x20] sm:$0xff]   ;;  %v928_v5 = vld [vmem:[#allocation5 + $0x18] sm:$0xff]   ;;  %v1150_v63 = vmov 0  }
  0x4d   :  { %890 = vmatprep.subr.bf16.mxu1 %v1148_v0  ;;  %906 = vmatprep.mubr.msk.bf16.mxu1 %vm1149_vm0, %v1148_v0  ;;  %v929_v6 = vld [vmem:[#allocation5 + $0x10] sm:$0xff]   ;;  %v930_v7 = vld [vmem:[#allocation5 + $0x8] sm:$0xff]   ;;  %v931_v8 = vld [vmem:[#allocation5] sm:$0xff]  }
  0x4e   :  { %871 = vmatpush3.bf16.msra.mxu0 %v924_v1  ;;  %v111_v9 = vld [vmem:[#allocation2 + $0x8] sm:$0xff]  ;;  %v773_v11 = vld [vmem:[#allocation11] ss:$0 sm:$0xff]  ;;  %v110_v13 = vld [vmem:[#allocation2] sm:$0xff] }
  0x4f   :  { %872 = vmatprep.subr.bf16.mxu0 %v1148_v0  ;;  %v121_v10 = vpack.c.bf16 %v111_v9, %v111_v9  ;;  %v932_v19 = vld [vmem:[#allocation7 + $0x38] sm:$0xff]   ;;  %v933_v20 = vld [vmem:[#allocation7 + $0x30] sm:$0xff]   ;;  %v934_v25 = vld [vmem:[#allocation7 + $0x28] sm:$0xff]  }
  0x50   :  { %891 = vmatpush3.bf16.msra.mxu1 %v932_v19  ;;  %v935_v26 = vld [vmem:[#allocation7 + $0x20] sm:$0xff]   ;;  %v936_v27 = vld [vmem:[#allocation7 + $0x18] sm:$0xff]   ;;  %v937_v28 = vld [vmem:[#allocation7 + $0x10] sm:$0xff]  }
  0x51   :  { %892 = vmatprep.subr.bf16.mxu1 %v1148_v0  ;;  %v938_v29 = vld [vmem:[#allocation7 + $0x8] sm:$0xff]   ;;  %v939_v30 = vld [vmem:[#allocation7] sm:$0xff]   ;;  %v940_v48 = vld [vmem:[#allocation8 + $0x70] ss:$8 sps:$4 sm:$0xff]  }
  0x52   :  { %873 = vmatpush3.bf16.msra.mxu0 %v925_v2  ;;  %v782_v35 = vld [vmem:[#allocation11 + $0x2] ss:$0 sm:$0xff]  ;;  %v783_v37 = vld [vmem:[#allocation11 + $0x3] ss:$0 sm:$0xff]  ;;  %v784_v41 = vld [vmem:[#allocation11 + $0x1] ss:$0 sm:$0xff] }
  0x53   :  { %874 = vmatprep.subr.bf16.mxu0 %v1148_v0  ;;  %v942_v49 = vld [vmem:[#allocation8 + $0x74] ss:$8 sps:$4 sm:$0xff]   ;;  %v945_v50 = vld [vmem:[#allocation8 + $0x64] ss:$8 sps:$4 sm:$0xff]   ;;  %v943_v51 = vld [vmem:[#allocation8 + $0x60] ss:$8 sps:$4 sm:$0xff]  }
  0x54   :  { %893 = vmatpush3.bf16.msra.mxu1 %v933_v20  ;;  %v948_v56 = vld [vmem:[#allocation8 + $0x54] ss:$8 sps:$4 sm:$0xff]   ;;  %v946_v57 = vld [vmem:[#allocation8 + $0x50] ss:$8 sps:$4 sm:$0xff]   ;;  %v949_v58 = vld [vmem:[#allocation8 + $0x40] ss:$8 sps:$4 sm:$0xff]  }
  0x55   :  { %894 = vmatprep.subr.bf16.mxu1 %v1148_v0  ;;  %v951_v59 = vld [vmem:[#allocation8 + $0x44] ss:$8 sps:$4 sm:$0xff]   ;;  %v954_v60 = vld [vmem:[#allocation8 + $0x34] ss:$8 sps:$4 sm:$0xff]   ;;  %v952_v61 = vld [vmem:[#allocation8 + $0x30] ss:$8 sps:$4 sm:$0xff]  }
  0x56   :  { %875 = vmatpush3.bf16.msra.mxu0 %v926_v3  ;;  %v957_v62 = vld [vmem:[#allocation8 + $0x24] ss:$8 sps:$4 sm:$0xff]   ;;  %v960_v1 = vld [vmem:[#allocation8 + $0x14] ss:$8 sps:$4 sm:$0xff]   ;;  %v958_v2 = vld [vmem:[#allocation8 + $0x10] ss:$8 sps:$4 sm:$0xff]  }
  0x57   :  { %876 = vmatprep.subr.bf16.mxu0 %v1148_v0  ;;  %v963_v3 = vld [vmem:[#allocation8 + $0x4] ss:$8 sps:$4 sm:$0xff]  }
  0x58   :  { %895 = vmatpush3.bf16.msra.mxu1 %v934_v25  ;;  %v793_v19 = vld [vmem:[#allocation11 + $0x4] ss:$0 sm:$0xff]  ;;  %v974_v25 = vld [vmem:[#allocation10 + $0x50] sm:$0xff]  }
  0x59   :  { %896 = vmatprep.subr.bf16.mxu1 %v1148_v0 }
  0x5a   :  { %877 = vmatpush3.bf16.msra.mxu0 %v927_v4  ;;  %v961_v4 = vld [vmem:[#allocation8] ss:$8 sps:$4 sm:$0xff]  }
  0x5b   :  { %878 = vmatprep.subr.bf16.mxu0 %v1148_v0 }
  0x5c   :  { %897 = vmatpush3.bf16.msra.mxu1 %v935_v26  ;;  %v975_v26 = vld [vmem:[#allocation10 + $0x10] sm:$0xff]  }
  0x5d   :  { %898 = vmatprep.subr.bf16.mxu1 %v1148_v0 }
  0x5e   :  { %879 = vmatpush3.bf16.msra.mxu0 %v928_v5  ;;  %v964_v5 = vld [vmem:[#allocation10 + $0x78] sm:$0xff]  }
  0x5f   :  { %880 = vmatprep.subr.bf16.mxu0 %v1148_v0 }
  0x60   :  { %899 = vmatpush3.bf16.msra.mxu1 %v936_v27  ;;  %v976_v27 = vld [vmem:[#allocation10 + $0x48] sm:$0xff]  }
  0x61   :  { %900 = vmatprep.subr.bf16.mxu1 %v1148_v0 }
  0x62   :  { %881 = vmatpush3.bf16.msra.mxu0 %v929_v6  ;;  %v965_v6 = vld [vmem:[#allocation10 + $0x38] sm:$0xff]  }
  0x63   :  { %882 = vmatprep.subr.bf16.mxu0 %v1148_v0 }
  0x64   :  { %901 = vmatpush3.bf16.msra.mxu1 %v937_v28  ;;  %v977_v28 = vld [vmem:[#allocation10 + $0x8] sm:$0xff]  }
  0x65   :  { %902 = vmatprep.subr.bf16.mxu1 %v1148_v0 }
  0x66   :  { %883 = vmatpush3.bf16.msra.mxu0 %v930_v7  ;;  %v966_v7 = vld [vmem:[#allocation10 + $0x70] sm:$0xff]  }
  0x67   :  { %884 = vmatprep.subr.bf16.mxu0 %v1148_v0 }
  0x68   :  { %903 = vmatpush3.bf16.msra.mxu1 %v938_v29  ;;  %v978_v29 = vld [vmem:[#allocation10 + $0x40] sm:$0xff]  }
  0x69   :  { %904 = vmatprep.subr.bf16.mxu1 %v1148_v0  ;;  %v955_v0 = vld [vmem:[#allocation8 + $0x20] ss:$8 sps:$4 sm:$0xff]  }
  0x6a   :  { %885 = vmatpush3.bf16.msra.mxu0 %v931_v8  ;;  %v967_v8 = vld [vmem:[#allocation10 + $0x30] sm:$0xff]  }
  0x6b   :  { %493 = vmatprep.subr.bf16.mxu0 %v942_v49 }
  0x6c   :  { %905 = vmatpush3.bf16.msra.mxu1 %v939_v30  ;;  %v979_v30 = vld [vmem:[#allocation10] sm:$0xff]  }
  0x6d   :  { %887 = vmatmul.mubr.bf16.vlgmr.msra.gmra.mxu0 %v121_v10  ;;  %848 = vmatprep.subr.bf16.mxu1 %v964_v5  ;;  %v969_v10 = vld [vmem:[#allocation10 + $0x28] sm:$0xff]  }
  0x6e   :  { %494 = vmatpush1.bf16.msra.mxu0 %v940_v48  ;;  %525 = vmatprep.mubr.bf16.mxu0 %v1150_v63 }
  0x6f   :  { %495 = vmatprep.subr.bf16.mxu0 %v945_v50 }
  0x72   :  { %496 = vmatpush1.bf16.msra.mxu0 %v943_v51 }
  0x73   :  { %497 = vmatprep.subr.bf16.mxu0 %v948_v56 }
  0x76   :  { %498 = vmatpush1.bf16.msra.mxu0 %v946_v57 }
  0x77   :  { %499 = vmatprep.subr.bf16.mxu0 %v951_v59 }
  0x7a   :  { %500 = vmatpush1.bf16.msra.mxu0 %v949_v58 }
  0x7b   :  { %501 = vmatprep.subr.bf16.mxu0 %v954_v60 }
  0x7e   :  { %502 = vmatpush1.bf16.msra.mxu0 %v952_v61 }
  0x7f   :  { %503 = vmatprep.subr.bf16.mxu0 %v957_v62 }
  0x82   :  { %504 = vmatpush1.bf16.msra.mxu0 %v955_v0 }
  0x83   :  { %505 = vmatprep.subr.bf16.mxu0 %v960_v1 }
  0x86   :  { %506 = vmatpush1.bf16.msra.mxu0 %v958_v2 }
  0x87   :  { %507 = vmatprep.subr.bf16.mxu0 %v963_v3 }
  0x8a   :  { %508 = vmatpush1.bf16.msra.mxu0 %v961_v4 }
 0x12d   :  { %v224_v12 = vpop.f32.mrf.mxu0 }
 0x12e   :  { %v225_v14 = vadd.f32 %v773_v11, %v224_v12  ;;  %v970_v11 = vld [vmem:[#allocation10 + $0x60] sm:$0xff]  }
 0x12f   :  { %v888_v15 = vpop.f32.mrf.mxu0  ;;  %v971_v12 = vld [vmem:[#allocation10 + $0x20] sm:$0xff]  }
 0x130   :  { %v230_v16 = vadd.f32 %v225_v14, %v110_v13  ;;  %v972_v13 = vld [vmem:[#allocation10 + $0x58] sm:$0xff]  }
 0x131   :  { %v227_v17 = vpop.f32.mrf.mxu0  ;;  %v973_v14 = vld [vmem:[#allocation10 + $0x18] sm:$0xff]  }
 0x132   :  { %231 = vadd.xlane.f32.xlu0 %v230_v16 }
 0x133   :  { %v889_v18 = vpop.f32.mrf.mxu0 }
 0x1bb   :  { %v232_v21 = vpop.xlane.xlu0 %231 }
 0x1bc   :  { %v234_v22 = vmul.f32 0.0078125, %v232_v21  ;;  %v794_v21 = vld [vmem:[#allocation11 + $0x5] ss:$0 sm:$0xff] }
 0x1be   :  { %v235_v23 = vsub.f32 %v230_v16, %v234_v22 }
 0x1c0   :  { %v236_v24 = vmul.f32 %v235_v23, %v235_v23 }
 0x1c2   :  { %237 = vadd.xlane.f32.xlu0 %v236_v24 }
 0x24b   :  { %v238_v31 = vpop.xlane.xlu0 %237 }
 0x24c   :  { %v239_v32 = vmul.f32 0.0078125, %v238_v31  ;;  %v403_v31 = vlaneseq }
 0x24e   :  { %v240_v33 = vadd.f32 1e-05, %v239_v32  ;;  %v404_v32 = vshrl.u32 %v403_v31, 7 }
 0x250   :  { %980 = vrsqrt.f32 %v240_v33  ;;  %v409_v33 = vsub.s32 1, %v404_v32 }
 0x25d   :  { %v981_v34 = vpop.eup %980 }
 0x25e   :  { %v242_v36 = vmul.f32 %v981_v34, %v235_v23  ;;  %v405_v34 = vsub.s32 0, %v404_v32 }
 0x260   :  { %v247_v38 = vmul.f32 %v782_v35, %v242_v36  ;;  %v401_v35 = vld [vmem:[%s1267_s6] sm:$0x3]  ;;  %s1151_s6 = smov [#allocation13]  }
 0x261   :  { %s758_s27 = sshll.u32 %s1151_s6, 4  ;;  %s759_s27 = int_to_ptr.vmem [resolvable:$true] %s758_s27 }
 0x262   :  { %v1246_v39 = vadd.f32 %v783_v37, %v247_v38  ;;  %v410_v37 = vrot.slane %v401_v35, %v409_v33  ;;  %v406_v38 = vrot.slane %v401_v35, %v405_v34  ;;  %s1108_s28 = scalar_lea.vmem %s759_s27, 256  ;;  %p1113_p3 = scmp.lt.s32.totalorder %s759_s27, %s759_s27 }
 0x263   :  { %p1109_p2 = scmp.ne.s32.totalorder %s759_s27, %s1108_s28  ;;  %p1114_p4 = scmp.lt.s32.totalorder %s1108_s28, %s1108_s28 }
 0x264   :  { %v253_v40 = vpack.c.bf16 %v1246_v39, %v1246_v39 }
 0x265   :  { %p1115_p5 = por %p1114_p4, %p1113_p3 }
 0x266   :  { %907 = vmatmul.mubr.bf16.vlgmr.msra.gmra.mxu1 %v253_v40 }
 0x267   :  { %849 = vmatpush3.bf16.msra.mxu1 %v965_v6  ;;  %p1116_p6 = pnand %p1115_p5, %p1109_p2 }
 0x268   :  { %850 = vmatprep.subr.bf16.mxu1 %v966_v7 }
 0x26b   :  { %851 = vmatpush3.bf16.msra.mxu1 %v967_v8 }
 0x326   :  { %v356_v42 = vpop.f32.mrf.mxu1 }
 0x327   :  { %v357_v43 = vadd.f32 %v784_v41, %v356_v42 }
 0x328   :  { %v908_v44 = vpop.f32.mrf.mxu1 }
 0x329   :  { %v362_v45 = vadd.f32 %v357_v43, %v111_v9  ;;  %v968_v9 = vld [vmem:[#allocation10 + $0x68] sm:$0xff]  }
 0x32a   :  { %v359_v46 = vpop.f32.mrf.mxu1  ;;  %852 = vmatprep.subr.bf16.mxu1 %v968_v9 }
 0x32b   :  { %363 = vadd.xlane.f32.xlu1 %v362_v45  ;;  %853 = vmatpush3.bf16.msra.mxu1 %v969_v10 }
 0x32c   :  { %v909_v47 = vpop.f32.mrf.mxu1  ;;  %854 = vmatprep.subr.bf16.mxu1 %v970_v11 }
 0x32f   :  { %855 = vmatpush3.bf16.msra.mxu1 %v971_v12 }
 0x330   :  { %856 = vmatprep.subr.bf16.mxu1 %v972_v13 }
 0x333   :  { %857 = vmatpush3.bf16.msra.mxu1 %v973_v14  ;;  %v828_v14 = vld [vmem:[#allocation11 + $0x6] ss:$0 sm:$0xff] }
 0x334   :  { %858 = vmatprep.subr.bf16.mxu1 %v974_v25 }
 0x337   :  { %859 = vmatpush3.bf16.msra.mxu1 %v975_v26 }
 0x338   :  { %860 = vmatprep.subr.bf16.mxu1 %v976_v27 }
 0x33b   :  { %861 = vmatpush3.bf16.msra.mxu1 %v977_v28 }
 0x33c   :  { %862 = vmatprep.subr.bf16.mxu1 %v978_v29 }
 0x33f   :  { %863 = vmatpush3.bf16.msra.mxu1 %v979_v30 }
 0x3b4   :  { %v364_v52 = vpop.xlane.xlu1 %363 }
 0x3b5   :  { %v365_v53 = vmul.f32 0.0078125, %v364_v52 }
 0x3b7   :  { %v366_v54 = vsub.f32 %v362_v45, %v365_v53 }
 0x3b9   :  { %v367_v55 = vmul.f32 %v366_v54, %v366_v54 }
 0x3bb   :  { %368 = vadd.xlane.f32.xlu1 %v367_v55 }
 0x444   :  { %v369_v15 = vpop.xlane.xlu1 %368 }
 0x445   :  { %v370_v16 = vmul.f32 0.0078125, %v369_v15 }
 0x447   :  { %v371_v17 = vadd.f32 1e-05, %v370_v16  ;;  %v829_v16 = vld [vmem:[#allocation11 + $0x7] ss:$0 sm:$0xff] }
 0x449   :  { %982 = vrsqrt.f32 %v371_v17 }
 0x456   :  { %v983_v18 = vpop.eup %982 }
 0x457   :  { %v373_v20 = vmul.f32 %v983_v18, %v366_v54  ;;  %v811_v54 = vld [vmem:[#allocation11 + $0x8] ss:$0 sm:$0xff] }
 0x459   :  { %v378_v22 = vmul.f32 %v793_v19, %v373_v20 }
 0x45b   :  { %v383_v23 = vadd.f32 %v794_v21, %v378_v22 }
 0x45d   :  { %v384_v24 = vpack.c.bf16 %v383_v23, %v1246_v39 }
 0x45f   :  { %526 = vmatmul.mubr.bf16.vlgmr.msra.gmra.mxu0 %v384_v24 }
 0x51f   :  { %v527_v36 = vpop.f32.mrf.mxu0 }
 0x520   :  { %v528_v44 = vadd.f32 %v527_v36, %v406_v38 }
 0x521   :  { %v529_v40 = vpop.f32.mrf.mxu0 }
 0x522   :  { %v530_v42 = vadd.f32 %v529_v40, %v410_v37  ;;  %v536_v50 = vmax.f32 %v528_v44, 0.0 }
 0x523   :  { %v531_v41 = vpop.f32.mrf.mxu0 }
 0x524   :  { %v532_v43 = vadd.f32 %v531_v41, %v406_v38  ;;  %v537_v48 = vmax.f32 %v530_v42, 0.0 }
 0x525   :  { %v533_v45 = vpop.f32.mrf.mxu0 }
 0x526   :  { %v534_v46 = vadd.f32 %v533_v45, %v410_v37  ;;  %v538_v47 = vmax.f32 %v532_v43, 0.0 }
 0x528   :  { %v539_v49 = vmax.f32 %v534_v46, 0.0  ;;  %v540_v52 = vpack.c.bf16 %v538_v47, %v536_v50 }
 0x52a   :  { %v541_v51 = vpack.c.bf16 %v539_v49, %v537_v48 }
 0x52c   :  { %706 = vmatprep.mubr.bf16.mxu1 %v541_v51 }
 0x52d   :  { %707 = vmatmul.mubr.bf16.vlgmr.msra.gmra.mxu1 %v540_v52 }
 0x5ed   :  { %v864_v53 = vpop.f32.mrf.mxu1 }
 0x5ef   :  { %v865_v55 = vpop.f32.mrf.mxu1 }
 0x5f0   :  { %v866_v56 = vadd.f32 %v865_v55, %v864_v53 }
 0x5f1   :  { %v867_v57 = vpop.f32.mrf.mxu1 }
 0x5f2   :  { %v709_v58 = vadd.f32 %v866_v56, %v811_v54 }
 0x5f3   :  { %v868_v59 = vpop.f32.mrf.mxu1 }
 0x5f4   :  { %v869_v60 = vadd.f32 %v868_v59, %v867_v57  ;;  %v715_v61 = vadd.f32 %v709_v58, %v1246_v39 }
 0x5f6   :  { %v712_v62 = vadd.f32 %v869_v60, %v811_v54  ;;  %717 = vadd.xlane.f32.xlu0 %v715_v61 }
 0x5f8   :  { %v716_v63 = vadd.f32 %v712_v62, %v383_v23 }
 0x5fa   :  { %719 = vadd.xlane.f32.xlu1 %v716_v63 }
 0x67f   :  { %v718_v0 = vpop.xlane.xlu0 %717 }
 0x680   :  { %v721_v1 = vmul.f32 0.0078125, %v718_v0 }
 0x682   :  { %v723_v2 = vsub.f32 %v715_v61, %v721_v1 }
 0x683   :  { %v720_v3 = vpop.xlane.xlu1 %719 }
 0x684   :  { %v722_v4 = vmul.f32 0.0078125, %v720_v3  ;;  %v725_v5 = vmul.f32 %v723_v2, %v723_v2 }
 0x686   :  { %v724_v6 = vsub.f32 %v716_v63, %v722_v4  ;;  %727 = vadd.xlane.f32.xlu0 %v725_v5 }
 0x688   :  { %v726_v7 = vmul.f32 %v724_v6, %v724_v6 }
 0x68a   :  { %729 = vadd.xlane.f32.xlu1 %v726_v7 }
 0x70f   :  { %v728_v8 = vpop.xlane.xlu0 %727 }
 0x710   :  { %v731_v9 = vmul.f32 0.0078125, %v728_v8 }
 0x712   :  { %v733_v10 = vadd.f32 1e-05, %v731_v9 }
 0x713   :  { %v730_v11 = vpop.xlane.xlu1 %729 }
 0x714   :  { %984 = vrsqrt.f32 %v733_v10  ;;  %v732_v39 = vmul.f32 0.0078125, %v730_v11 }
 0x716   :  { %v734_v12 = vadd.f32 1e-05, %v732_v39 }
 0x718   :  { %986 = vrsqrt.f32 %v734_v12 }
 0x721   :  { %v985_v13 = vpop.eup %984 }
 0x722   :  { %v737_v15 = vmul.f32 %v985_v13, %v723_v2 }
 0x724   :  { %v743_v17 = vmul.f32 %v828_v14, %v737_v15 }
 0x725   :  { %v987_v18 = vpop.eup %986 }
 0x726   :  { %v738_v19 = vmul.f32 %v987_v18, %v724_v6  ;;  %v749_v20 = vadd.f32 %v829_v16, %v743_v17 }
 0x728   :  { %v744_v21 = vmul.f32 %v828_v14, %v738_v19  ;;  %751 = vst [vmem:[#allocation13] sm:$0xff] %v749_v20 }
 0x72a   :  { %v750_v22 = vadd.f32 %v829_v16, %v744_v21 }
 0x72c   :  { %752 = vst [vmem:[#allocation13 + $0x8] sm:$0xff] %v750_v22 }
 0x72d   :  { %1119 = shalt.err (!%p1116_p6)
}
 0x72e   :  { %764 = dma.vmem_to_hbm [thread:$0]  %s759_s27, 256, %s1268_s7, [#allocation4], %s1143_s13, %s1143_s13, %s1144_s14  }
 0x72f   :  { %1136 = dma.done.wait [#allocation4], 256  }
 0x730   :  { %1137 = vsyncadd [#allocation4], 4294967040 }
 0x731   :  { %768 = vsyncpa [#allocation3], 1 }
 0x732   :  { %769 = vsyncpa [#allocation6], 1 }
 0x733   :  { %770 = vsyncpa [#allocation9], 1 }
 0x734   :  { %771 = vsyncpa [#allocation12], 1 }
 0x735   :  { %772 = vsyncpa [#allocation4], 1 }

</bundles_post_ra>
